<compile_context>
chip_gen: v7x
topology: tpu7x:2x2x1
jax: 0.10.0
libtpu: 0.0.40
codegen_flags: <defaults>
</compile_context>

<pallas_src>
import functools

import jax
import jax.numpy as jnp
from jax.experimental import pallas as pl
from jax.experimental.pallas import tpu as pltpu


_MIN_ROW_TILE = 32  # sublane-safe tile granularity for f32(8)/bf16(16)/int8(32)


def _gru_linear_kernel(xh_ref, xi_ref, wh_ref, wi_ref, b_ref, o_ref):
    # xh_ref: (tm, R*G)   packed hidden rows
    # xi_ref: (tm, R)     packed input scalars
    # wh_ref: (R*G, R*O)  kron(I_R, W[1:])   (block-diagonal, fully resident)
    # wi_ref: (R,   R*O)  kron(I_R, W[0:1])
    # b_ref : (1,   R*O)  bias tiled R times
    # o_ref : (tm,  R*O)  lane-dense output slab
    #
    # Default MXU precision (bf16 passes) is kept deliberately: the kernel is
    # HBM-bound and the kron packing inflates MXU work ~Rx, so forcing HIGHEST
    # precision could flip v5e to MXU-bound.  f32 accumulation is preserved.
    acc = jnp.dot(xh_ref[...], wh_ref[...], preferred_element_type=jnp.float32)
    acc = acc + jnp.dot(xi_ref[...], wi_ref[...],
                        preferred_element_type=jnp.float32)
    o_ref[...] = (acc + b_ref[...].astype(jnp.float32)).astype(o_ref.dtype)


def pick_rows_per_pack(total_rows, output_dim, target_lanes=128):
    """Largest packing factor R <= target_lanes//O that divides B*N.

    target_lanes=256 is an optional v6e/v7x variant (matches the 2x256 MXU and
    a 2-vreg-wide output slab); 128 is the safe default while HBM-bound.
    """
    r = max(1, int(target_lanes) // int(output_dim))
    while r > 1 and int(total_rows) % r != 0:
        r //= 2
    return max(1, r)


def pack_gru_linear_weights(weights, biases, rows_per_pack):
    """Precompute the block-diagonal (kron) weight layout.

    Hoist this out of any per-timestep GRU loop: it depends only on the
    weights and on R = pick_rows_per_pack(batch*num_nodes, output_dim).
    """
    R = int(rows_per_pack)
    O = int(weights.shape[1])
    eye_r = jnp.eye(R, dtype=weights.dtype)
    wh_big = jnp.kron(eye_r, weights[1:, :])                # (R*G, R*O)
    wi_big = jnp.kron(eye_r, weights[0:1, :])               # (R,   R*O)
    b_big = jnp.tile(jnp.reshape(biases, (1, O)), (1, R))   # (1,   R*O)
    return wh_big, wi_big, b_big


def _choose_row_tile(mr, row_tile):
    """Row tile (in packed rows): big tiles amortize per-step overhead, but we
    keep >=2 grid steps when possible so v7x's two TensorCores both get work."""
    if mr <= row_tile:
        if mr >= 2 * _MIN_ROW_TILE:
            tm = -(-((mr + 1) // 2) // _MIN_ROW_TILE) * _MIN_ROW_TILE
            return min(tm, mr)
        return mr
    tm = max(_MIN_ROW_TILE, (int(row_tile) // _MIN_ROW_TILE) * _MIN_ROW_TILE)
    return min(tm, mr)


@functools.partial(jax.jit, static_argnames=("rows_per_pack", "row_tile"))
def gru_linear_packed(inputs, hidden_state, wh_big, wi_big, b_big, *,
                      rows_per_pack, row_tile=1024):
    """Apply GRULinear with pre-packed weights (see pack_gru_linear_weights)."""
    B, N = inputs.shape
    R = int(rows_per_pack)
    RG, RO = wh_big.shape
    G = RG // R
    O = RO // R
    M = B * N
    if M % R != 0:
        raise ValueError(f"rows_per_pack={R} must divide batch*num_nodes={M}")
    if hidden_state.size != M * G:
        raise ValueError("hidden_state size does not match inputs/weights")
    Mr = M // R

    # Free, contiguity-preserving reinterpretations of the caller's arrays.
    xh = hidden_state.reshape(Mr, R * G)
    xi = inputs.reshape(Mr, R)

    tm = _choose_row_tile(Mr, int(row_tile))
    # Ragged last block is safe: packed rows are independent (block-diagonal
    # weights), and Pallas masks the out-of-range portion of the output write.
    grid = (pl.cdiv(Mr, tm),)

    out_dtype = inputs.dtype
    isz = lambda d: jnp.dtype(d).itemsize

    # Explicit scoped-VMEM limit from the real footprint (double-buffered data
    # tiles + weight blocks), with 2x headroom; v5e's default is only 16 MiB.
    tile_bytes = tm * (R * G * isz(xh.dtype) + R * isz(xi.dtype)
                       + R * O * isz(out_dtype))
    const_bytes = (RG * RO * isz(wh_big.dtype) + R * RO * isz(wi_big.dtype)
                   + RO * isz(b_big.dtype))
    need = 2 * (tile_bytes + const_bytes)
    vmem_limit = int(min(max(2 * need, 32 << 20), 48 << 20))

    cost = pl.CostEstimate(
        # Logical flops of the op (the MXU actually executes ~R x more because
        # of the zero-padded kron packing); advisory for XLA scheduling only.
        flops=2 * M * (G + 1) * O,
        transcendentals=0,
        bytes_accessed=(M * G * isz(xh.dtype) + M * isz(xi.dtype)
                        + M * O * isz(out_dtype)
                        + (RG + R + 1) * RO * isz(wh_big.dtype)),
    )

    out = pl.pallas_call(
        _gru_linear_kernel,
        out_shape=jax.ShapeDtypeStruct((Mr, R * O), out_dtype),
        grid=grid,
        in_specs=[
            pl.BlockSpec((tm, R * G), lambda i: (i, 0)),     # packed hidden rows
            pl.BlockSpec((tm, R), lambda i: (i, 0)),         # packed input scalars
            pl.BlockSpec((R * G, R * O), lambda i: (0, 0)),  # W[1:] (block-diag)
            pl.BlockSpec((R, R * O), lambda i: (0, 0)),      # W[0]  (block-diag)
            pl.BlockSpec((1, R * O), lambda i: (0, 0)),      # bias
        ],
        out_specs=pl.BlockSpec((tm, R * O), lambda i: (i, 0)),
        compiler_params=pltpu.CompilerParams(
            dimension_semantics=("parallel",),
            vmem_limit_bytes=vmem_limit),
        cost_estimate=cost,
    )(xh, xi, wh_big, wi_big, b_big)

    return out.reshape(B, N * O)   # free bitcast


def gru_linear(inputs, hidden_state, weights, biases,
               num_gru_units, output_dim, row_tile=1024, target_lanes=128):
    """Drop-in GRULinear.forward.

    Inside a per-timestep GRU loop, prefer calling pack_gru_linear_weights()
    once and gru_linear_packed() per step so the kron packing is not
    re-materialized every timestep.
    """
    B, N = inputs.shape
    assert weights.shape[0] == int(num_gru_units) + 1
    assert weights.shape[1] == int(output_dim)
    R = pick_rows_per_pack(B * N, int(output_dim), target_lanes)
    wh_big, wi_big, b_big = pack_gru_linear_weights(weights, biases, R)
    return gru_linear_packed(inputs, hidden_state, wh_big, wi_big, b_big,
                             rows_per_pack=R, row_tile=int(row_tile))


def init_params(key, num_gru_units, output_dim, bias_init_value=0.0):
    """xavier_uniform_ weights + constant biases (as in reset_parameters)."""
    fan_in, fan_out = num_gru_units + 1, output_dim
    bound = (6.0 / (fan_in + fan_out)) ** 0.5
    weights = jax.random.uniform(
        key, (fan_in, fan_out), minval=-bound, maxval=bound, dtype=jnp.float32)
    biases = jnp.full((output_dim,), bias_init_value, dtype=jnp.float32)
    return weights, biases


if __name__ == "__main__":
    def reference(inputs, hidden_state, weights, biases, G, O):
        B, N = inputs.shape
        concat = jnp.concatenate(
            [inputs.reshape(B, N, 1), hidden_state.reshape(B, N, G)], axis=2)
        out = concat.reshape(-1, G + 1) @ weights + biases
        return out.reshape(B, N * O)

    key = jax.random.PRNGKey(0)
    k_w, k_in, k_h, k_in2, k_h2 = jax.random.split(key, 5)

    # Small shapes consistent with the module's forward.
    B, N, G, O = 2, 16, 32, 8
    weights, biases = init_params(k_w, G, O, bias_init_value=0.1)
    inputs = jax.random.normal(k_in, (B, N), dtype=jnp.float32)
    hidden = jax.random.normal(k_h, (B, N * G), dtype=jnp.float32)

    out = jax.block_until_ready(
        gru_linear(inputs, hidden, weights, biases, G, O))
    ref = reference(inputs, hidden, weights, biases, G, O)
    assert out.shape == (B, N * O)
    assert jnp.allclose(out, ref, atol=1e-4, rtol=1e-4), (
        "max |diff| = %g" % float(jnp.max(jnp.abs(out - ref))))

    # Ragged B*N (not divisible by 128//O): handled by reducing the packing
    # factor R instead of padding -> no extra HBM passes, still correct.
    B2, N2 = 2, 13
    inputs2 = jax.random.normal(k_in2, (B2, N2), dtype=jnp.float32)
    hidden2 = jax.random.normal(k_h2, (B2, N2 * G), dtype=jnp.float32)
    out2 = jax.block_until_ready(
        gru_linear(inputs2, hidden2, weights, biases, G, O))
    ref2 = reference(inputs2, hidden2, weights, biases, G, O)
    assert out2.shape == (B2, N2 * O)
    assert jnp.allclose(out2, ref2, atol=1e-4, rtol=1e-4), (
        "max |diff| = %g" % float(jnp.max(jnp.abs(out2 - ref2))))

    print("KERNEL_OK")
</pallas_src>

<mosaic_0001>
module attributes {stable_mosaic.version = 11 : i64} {
  func.func @_gru_linear_kernel(%arg0: i32, %arg1: memref<2x512xf32, #tpu.memory_space<vmem>>, %arg2: memref<2x16xf32, #tpu.memory_space<vmem>>, %arg3: memref<512x128xf32, #tpu.memory_space<vmem>>, %arg4: memref<16x128xf32, #tpu.memory_space<vmem>>, %arg5: memref<1x128xf32, #tpu.memory_space<vmem>>, %arg6: memref<2x128xf32, #tpu.memory_space<vmem>>) attributes {dimension_semantics = [#tpu.dimension_semantics<parallel>], iteration_bounds = array<i64: 1>, scalar_prefetch = 0 : i64, scratch_operands = 0 : i64, tpu.core_type = #tpu.core_type<tc>, window_params = [{transform_indices = @transform_0, window_bounds = array<i64: 2, 512>}, {transform_indices = @transform_1, window_bounds = array<i64: 2, 16>}, {pipeline_mode = #tpu.pipeline_mode<synchronous>, transform_indices = @transform_2, window_bounds = array<i64: 512, 128>}, {pipeline_mode = #tpu.pipeline_mode<synchronous>, transform_indices = @transform_3, window_bounds = array<i64: 16, 128>}, {pipeline_mode = #tpu.pipeline_mode<synchronous>, transform_indices = @transform_4, window_bounds = array<i64: 1, 128>}, {transform_indices = @transform_5, window_bounds = array<i64: 2, 128>}]} {
    %c0 = arith.constant 0 : index
    %c0_0 = arith.constant 0 : index
    %0 = vector.load %arg1[%c0, %c0_0] : memref<2x512xf32, #tpu.memory_space<vmem>>, vector<2x512xf32>
    %c0_1 = arith.constant 0 : index
    %c0_2 = arith.constant 0 : index
    %1 = vector.load %arg3[%c0_1, %c0_2] : memref<512x128xf32, #tpu.memory_space<vmem>>, vector<512x128xf32>
    %cst = arith.constant dense<0.000000e+00> : vector<2x128xf32>
    %2 = tpu.matmul %0, %1, %cst {dimension_numbers = #tpu.dot_dimension_numbers<[1], [0], [0], [1], [0, 0, 1, 1], [], []>} : vector<2x512xf32>, vector<512x128xf32>, vector<2x128xf32> -> vector<2x128xf32>
    %c0_3 = arith.constant 0 : index
    %c0_4 = arith.constant 0 : index
    %3 = vector.load %arg2[%c0_3, %c0_4] : memref<2x16xf32, #tpu.memory_space<vmem>>, vector<2x16xf32>
    %c0_5 = arith.constant 0 : index
    %c0_6 = arith.constant 0 : index
    %4 = vector.load %arg4[%c0_5, %c0_6] : memref<16x128xf32, #tpu.memory_space<vmem>>, vector<16x128xf32>
    %cst_7 = arith.constant dense<0.000000e+00> : vector<2x128xf32>
    %5 = tpu.matmul %3, %4, %cst_7 {dimension_numbers = #tpu.dot_dimension_numbers<[1], [0], [0], [1], [0, 0, 1, 1], [], []>} : vector<2x16xf32>, vector<16x128xf32>, vector<2x128xf32> -> vector<2x128xf32>
    %6 = arith.addf %2, %5 : vector<2x128xf32>
    %c0_8 = arith.constant 0 : index
    %c0_9 = arith.constant 0 : index
    %7 = vector.load %arg5[%c0_8, %c0_9] : memref<1x128xf32, #tpu.memory_space<vmem>>, vector<1x128xf32>
    %8 = vector.broadcast %7 : vector<1x128xf32> to vector<2x128xf32>
    %9 = arith.addf %6, %8 : vector<2x128xf32>
    %c0_10 = arith.constant 0 : index
    %c0_11 = arith.constant 0 : index
    %10 = vector.load %arg6[%c0_10, %c0_11] : memref<2x128xf32, #tpu.memory_space<vmem>>, vector<2x128xf32>
    tpu.vector_store %arg6[%c0_10, %c0_11], %9 {strides = array<i32>} : memref<2x128xf32, #tpu.memory_space<vmem>>, vector<2x128xf32>,
    return
  }
  func.func @transform_0(%arg0: i32) -> (i32, i32) {
    %c0_i32 = arith.constant 0 : i32
    %c0_i32_0 = arith.constant 0 : i32
    return %arg0, %c0_i32 : i32, i32
  }
  func.func @transform_1(%arg0: i32) -> (i32, i32) {
    %c0_i32 = arith.constant 0 : i32
    %c0_i32_0 = arith.constant 0 : i32
    return %arg0, %c0_i32 : i32, i32
  }
  func.func @transform_2(%arg0: i32) -> (i32, i32) {
    %c0_i32 = arith.constant 0 : i32
    %c0_i32_0 = arith.constant 0 : i32
    %c0_i32_1 = arith.constant 0 : i32
    return %c0_i32, %c0_i32_0 : i32, i32
  }
  func.func @transform_3(%arg0: i32) -> (i32, i32) {
    %c0_i32 = arith.constant 0 : i32
    %c0_i32_0 = arith.constant 0 : i32
    %c0_i32_1 = arith.constant 0 : i32
    return %c0_i32, %c0_i32_0 : i32, i32
  }
  func.func @transform_4(%arg0: i32) -> (i32, i32) {
    %c0_i32 = arith.constant 0 : i32
    %c0_i32_0 = arith.constant 0 : i32
    %c0_i32_1 = arith.constant 0 : i32
    return %c0_i32, %c0_i32_0 : i32, i32
  }
  func.func @transform_5(%arg0: i32) -> (i32, i32) {
    %c0_i32 = arith.constant 0 : i32
    %c0_i32_0 = arith.constant 0 : i32
    return %arg0, %c0_i32 : i32, i32
  }
}

</mosaic_0001>

<bundles_post_ra>
// kernel: gru_linear_packed.1
= control target key start
LH: loop header
LB: loop body
LE: loop exit
PB: predicated region body
PF: predicated region fallthrough
CT: control target
= control target key end

     0   :  { %10 = vsyncpa [#allocation3], 0  ;;  %s786_s0 = inlined_call_operand.hbm [shape: f32[2,512], index: 0, kind: input, shape index: {}]   ;;  %s787_s1 = inlined_call_operand.hbm [shape: f32[2,16], index: 1, kind: input, shape index: {}]   ;;  %s788_s2 = inlined_call_operand.hbm [shape: f32[512,128], index: 2, kind: input, shape index: {}]   ;;  %s789_s3 = inlined_call_operand.hbm [shape: f32[16,128], index: 3, kind: input, shape index: {}]   ;;  %s790_s4 = inlined_call_operand.vmem [shape: f32[1,128], index: 4, kind: input, shape index: {}]   ;;  %s791_s5 = inlined_call_operand.hbm [shape: f32[2,128], index: 5, kind: output, shape index: {}]  }
   0x1   :  { %11 = vsyncpa [#allocation6], 0 }
   0x2   :  { %12 = vsyncpa [#allocation9], 0 }
   0x3   :  { %13 = vsyncpa [#allocation4], 0  ;;  %s681_s18 = smov [#allocation5]   ;;  %s682_s20 = smov [#allocation2]  }
   0x4   :  { %s30_s19 = sshll.u32 %s681_s18, 4  ;;  %s20_s21 = sshll.u32 %s682_s20, 4  ;;  %s31_s19 = int_to_ptr.vmem [resolvable:$true] %s30_s19  ;;  %s21_s21 = int_to_ptr.vmem [resolvable:$true] %s20_s21 }
   0x5   :  { %s563_s24 = scalar_lea.hbm %s787_s1, 32 }
   0x6   :  { %p564_p0 = scmp.ne.s32.totalorder %s787_s1, %s563_s24  ;;  %p567_p1 = scmp.lt.u32.totalorder %s563_s24, %s787_s1 }
   0x8   :  { %p569_p2 = pnand %p567_p1, %p564_p0 }
   0xa   :  { %572 = shalt.err (!%p569_p2)
}
   0xb   :  { %s573_s29 = scalar_lea.vmem %s31_s19, 32  ;;  %p578_p4 = scmp.lt.s32.totalorder %s31_s19, %s31_s19 }
   0xc   :  { %p574_p3 = scmp.ne.s32.totalorder %s31_s19, %s573_s29  ;;  %p579_p5 = scmp.lt.s32.totalorder %s573_s29, %s573_s29 }
   0xe   :  { %p580_p6 = por %p579_p5, %p578_p4 }
  0x10   :  { %p581_p7 = pnand %p580_p6, %p574_p3 }
  0x12   :  { %584 = shalt.err (!%p581_p7)
}
  0x13   :  { %33 = dma.hbm_to_vmem [thread:$0]  %s787_s1, 32, %s31_s19, [#allocation6]  }
  0x14   :  { %s585_s9 = scalar_lea.hbm %s786_s0, 128 }
  0x15   :  { %p586_p8 = scmp.ne.s32.totalorder %s786_s0, %s585_s9  ;;  %p589_p9 = scmp.lt.u32.totalorder %s585_s9, %s786_s0 }
  0x17   :  { %p591_p10 = pnand %p589_p9, %p586_p8 }
  0x19   :  { %594 = shalt.err (!%p591_p10)
}
  0x1a   :  { %s595_s14 = scalar_lea.vmem %s21_s21, 128  ;;  %p600_p12 = scmp.lt.s32.totalorder %s21_s21, %s21_s21 }
  0x1b   :  { %p596_p11 = scmp.ne.s32.totalorder %s21_s21, %s595_s14  ;;  %p601_p13 = scmp.lt.s32.totalorder %s595_s14, %s595_s14 }
  0x1d   :  { %p602_p0 = por %p601_p13, %p600_p12 }
  0x1f   :  { %p603_p1 = pnand %p602_p0, %p596_p11 }
  0x21   :  { %606 = shalt.err (!%p603_p1)
}
  0x22   :  { %23 = dma.hbm_to_vmem [thread:$0]  %s786_s0, 128, %s21_s21, [#allocation3]  }
  0x23   :  { %s683_s16 = smov [#allocation7]   ;;  %s607_s20 = scalar_lea.hbm %s788_s2, 8192 }
  0x24   :  { %s39_s17 = sshll.u32 %s683_s16, 4  ;;  %p608_p2 = scmp.ne.s32.totalorder %s788_s2, %s607_s20  ;;  %s40_s17 = int_to_ptr.vmem [resolvable:$true] %s39_s17 }
  0x25   :  { %p611_p3 = scmp.lt.u32.totalorder %s607_s20, %s788_s2 }
  0x27   :  { %p613_p4 = pnand %p611_p3, %p608_p2 }
  0x29   :  { %616 = shalt.err (!%p613_p4)
}
  0x2a   :  { %s617_s26 = scalar_lea.vmem %s40_s17, 8192  ;;  %p622_p6 = scmp.lt.s32.totalorder %s40_s17, %s40_s17 }
  0x2b   :  { %p618_p5 = scmp.ne.s32.totalorder %s40_s17, %s617_s26  ;;  %p623_p7 = scmp.lt.s32.totalorder %s617_s26, %s617_s26 }
  0x2d   :  { %p624_p8 = por %p623_p7, %p622_p6 }
  0x2f   :  { %p625_p9 = pnand %p624_p8, %p618_p5 }
  0x31   :  { %628 = shalt.err (!%p625_p9)
}
  0x32   :  { %s684_s0 = smov 128   ;;  %s685_s21 = smov 8  }
  0x33   :  { %45 = dma.hbm_to_vmem [thread:$0]  %s788_s2, 8192, %s40_s17, [#allocation6], %s684_s0, %s684_s0, %s685_s21  }
  0x34   :  { %s686_s29 = smov [#allocation8]   ;;  %s629_s8 = scalar_lea.hbm %s789_s3, 256 }
  0x35   :  { %s51_s30 = sshll.u32 %s686_s29, 4  ;;  %p630_p10 = scmp.ne.s32.totalorder %s789_s3, %s629_s8  ;;  %s52_s30 = int_to_ptr.vmem [resolvable:$true] %s51_s30 }
  0x36   :  { %p633_p11 = scmp.lt.u32.totalorder %s629_s8, %s789_s3 }
  0x38   :  { %p635_p12 = pnand %p633_p11, %p630_p10 }
  0x3a   :  { %638 = shalt.err (!%p635_p12)
}
  0x3b   :  { %s639_s13 = scalar_lea.vmem %s52_s30, 256  ;;  %p644_p0 = scmp.lt.s32.totalorder %s52_s30, %s52_s30 }
  0x3c   :  { %p640_p13 = scmp.ne.s32.totalorder %s52_s30, %s639_s13  ;;  %p645_p1 = scmp.lt.s32.totalorder %s639_s13, %s639_s13 }
  0x3e   :  { %p646_p2 = por %p645_p1, %p644_p0 }
  0x40   :  { %p647_p3 = pnand %p646_p2, %p640_p13 }
  0x42   :  { %650 = shalt.err (!%p647_p3)
}
  0x43   :  { %57 = dma.hbm_to_vmem [thread:$0]  %s789_s3, 256, %s52_s30, [#allocation9], %s684_s0, %s684_s0, %s685_s21  }
  0x44   :  { %673 = dma.done.wait [#allocation3], 128  }
  0x45   :  { %674 = vsyncadd [#allocation3], 4294967168 }
  0x46   :  { %675 = dma.done.wait [#allocation6], 8224  }
  0x47   :  { %676 = vsyncadd [#allocation6], 4294959072 }
  0x48   :  { %677 = dma.done.wait [#allocation9], 256  }
  0x49   :  { %678 = vsyncadd [#allocation9], 4294967040  ;;  %v687_v0 = vmov 0.0|0.0   ;;  %vm688_vm0 = vmmov 0   ;;  %v689_v1 = vmov 0.0   ;;  %v138_v2 = vld [vmem:[#allocation8] sm:$0xff]  ;;  %v219_v50 = vlaneseq }
  0x4a   :  { %484 = vmatprep.subr.bf16.mxu0 %v687_v0  ;;  %481 = vmatprep.mubr.msk.f32.mxu0 %vm688_vm0, %v689_v1  ;;  %v139_v3 = vld [vmem:[#allocation8 + $0x8] sm:$0xff]  ;;  %v89_v4 = vld [vmem:[#allocation7 + $0x80] sm:$0xff]  ;;  %v137_v11 = vld [vmem:[#allocation5] sm:$0x3]  ;;  %vm140_vm1 = vcmask 130048   ;;  %s691_s15 = smov [#allocation10]  }
  0x4b   :  { %v485_v5 = vpack.c.bf16 %v139_v3, %v138_v2  ;;  %v90_v6 = vld [vmem:[#allocation7 + $0x88] sm:$0xff]  ;;  %v73_v7 = vld [vmem:[#allocation7] sm:$0xff]  ;;  %v91_v15 = vld [vmem:[#allocation7 + $0x90] sm:$0xff]  ;;  %v690_v48 = vmov 1983009808   ;;  %v220_v0 = vshrl.u32 %v219_v50, 7 }
  0x4c   :  { %v74_v8 = vld [vmem:[#allocation7 + $0x8] sm:$0xff]  ;;  %v487_v9 = vpack.c.bf16 %v90_v6, %v89_v4  ;;  %v121_v12 = vld [vmem:[#allocation7 + $0x180] sm:$0xff]  ;;  %v92_v16 = vld [vmem:[#allocation7 + $0x98] sm:$0xff]  ;;  %v217_v49 = vunpack.c.l.s4 %v690_v48  ;;  %s391_s16 = sshll.u32 %s691_s15, 4  ;;  %s392_s16 = int_to_ptr.vmem [resolvable:$true] %s391_s16 }
  0x4d   :  { %v489_v10 = vpack.c.bf16 %v74_v8, %v73_v7  ;;  %v122_v13 = vld [vmem:[#allocation7 + $0x188] sm:$0xff]  ;;  %486 = vmatpush3.bf16.msra.mxu0 %v485_v5  ;;  %v105_v17 = vld [vmem:[#allocation7 + $0x100] sm:$0xff]  ;;  %v491_v18 = vpack.c.bf16 %v92_v16, %v91_v15  ;;  %v75_v20 = vld [vmem:[#allocation7 + $0x10] sm:$0xff]  ;;  %s651_s17 = scalar_lea.vmem %s392_s16, 32  ;;  %p656_p5 = scmp.lt.s32.totalorder %s392_s16, %s392_s16 }
  0x4e   :  { %v519_v14 = vpack.c.bf16 %v122_v13, %v121_v12  ;;  %488 = vmatprep.subr.bf16.mxu1 %v487_v9  ;;  %v106_v19 = vld [vmem:[#allocation7 + $0x108] sm:$0xff]  ;;  %v76_v21 = vld [vmem:[#allocation7 + $0x18] sm:$0xff]  ;;  %v123_v24 = vld [vmem:[#allocation7 + $0x190] sm:$0xff]  ;;  %v218_v63 = vunpack.c.0.s8 %v217_v49  ;;  %p652_p4 = scmp.ne.s32.totalorder %s392_s16, %s651_s17  ;;  %p657_p6 = scmp.lt.s32.totalorder %s651_s17, %s651_s17 }
  0x4f   :  { %490 = vmatpush3.bf16.msra.mxu1 %v489_v10  ;;  %v521_v22 = vpack.c.bf16 %v106_v19, %v105_v17  ;;  %v493_v23 = vpack.c.bf16 %v76_v21, %v75_v20  ;;  %v124_v25 = vld [vmem:[#allocation7 + $0x198] sm:$0xff]  ;;  %v93_v26 = vld [vmem:[#allocation7 + $0xa0] sm:$0xff]  ;;  %v94_v28 = vld [vmem:[#allocation7 + $0xa8] sm:$0xff] }
  0x50   :  { %520 = vmatprep.subr.bf16.mxu0 %v519_v14  ;;  %482 = vmatmul.mubr.msk.f32.vlgmr.msra.gmra.mrb[0].mxu0 %vm140_vm1, %v137_v11  ;;  %v523_v27 = vpack.c.bf16 %v124_v25, %v123_v24  ;;  %v107_v29 = vld [vmem:[#allocation7 + $0x110] sm:$0xff]  ;;  %v108_v30 = vld [vmem:[#allocation7 + $0x118] sm:$0xff]  ;;  %v495_v31 = vpack.c.bf16 %v94_v28, %v93_v26  ;;  %v77_v33 = vld [vmem:[#allocation7 + $0x20] sm:$0xff]  ;;  %v221_v13 = vsub.s32 %v218_v63, %v220_v0  ;;  %p658_p7 = por %p657_p6, %p656_p5 }
  0x51   :  { %492 = vmatprep.subr.bf16.mxu1 %v491_v18  ;;  %522 = vmatpush3.bf16.msra.mxu0 %v521_v22  ;;  %v525_v32 = vpack.c.bf16 %v108_v30, %v107_v29  ;;  %v78_v34 = vld [vmem:[#allocation7 + $0x28] sm:$0xff]  ;;  %v125_v35 = vld [vmem:[#allocation7 + $0x1a0] sm:$0xff]  ;;  %v95_v37 = vld [vmem:[#allocation7 + $0xb0] sm:$0xff] }
  0x52   :  { %524 = vmatprep.subr.bf16.mxu0 %v523_v27  ;;  %v126_v36 = vld [vmem:[#allocation7 + $0x1a8] sm:$0xff]  ;;  %v96_v38 = vld [vmem:[#allocation7 + $0xb8] sm:$0xff]  ;;  %v497_v39 = vpack.c.bf16 %v78_v34, %v77_v33  ;;  %v109_v41 = vld [vmem:[#allocation7 + $0x120] sm:$0xff]  ;;  %p659_p8 = pnand %p658_p7, %p652_p4 }
  0x53   :  { %494 = vmatpush3.bf16.msra.mxu1 %v493_v23  ;;  %v527_v40 = vpack.c.bf16 %v126_v36, %v125_v35  ;;  %v110_v42 = vld [vmem:[#allocation7 + $0x128] sm:$0xff]  ;;  %v79_v43 = vld [vmem:[#allocation7 + $0x30] sm:$0xff]  ;;  %v499_v44 = vpack.c.bf16 %v96_v38, %v95_v37  ;;  %v80_v45 = vld [vmem:[#allocation7 + $0x38] sm:$0xff] }
  0x54   :  { %496 = vmatprep.subr.bf16.mxu1 %v495_v31  ;;  %v127_v46 = vld [vmem:[#allocation7 + $0x1b0] sm:$0xff]  ;;  %v128_v47 = vld [vmem:[#allocation7 + $0x1b8] sm:$0xff]  ;;  %v529_v51 = vpack.c.bf16 %v110_v42, %v109_v41  ;;  %v97_v52 = vld [vmem:[#allocation7 + $0xc0] sm:$0xff]  ;;  %v501_v57 = vpack.c.bf16 %v80_v45, %v79_v43 }
  0x55   :  { %526 = vmatpush3.bf16.msra.mxu0 %v525_v32  ;;  %v98_v53 = vld [vmem:[#allocation7 + $0xc8] sm:$0xff]  ;;  %v531_v54 = vpack.c.bf16 %v128_v47, %v127_v46  ;;  %v111_v55 = vld [vmem:[#allocation7 + $0x130] sm:$0xff]  ;;  %v112_v56 = vld [vmem:[#allocation7 + $0x138] sm:$0xff] }
  0x56   :  { %528 = vmatprep.subr.bf16.mxu0 %v527_v40  ;;  %v129_v58 = vld [vmem:[#allocation7 + $0x1c0] sm:$0xff]  ;;  %v130_v59 = vld [vmem:[#allocation7 + $0x1c8] sm:$0xff]  ;;  %v503_v60 = vpack.c.bf16 %v98_v53, %v97_v52  ;;  %v533_v1 = vpack.c.bf16 %v112_v56, %v111_v55  ;;  %v99_v2 = vld [vmem:[#allocation7 + $0xd0] sm:$0xff] }
  0x57   :  { %498 = vmatpush3.bf16.msra.mxu1 %v497_v39  ;;  %v81_v61 = vld [vmem:[#allocation7 + $0x40] sm:$0xff]  ;;  %v82_v62 = vld [vmem:[#allocation7 + $0x48] sm:$0xff]  ;;  %v100_v3 = vld [vmem:[#allocation7 + $0xd8] sm:$0xff]  ;;  %v535_v4 = vpack.c.bf16 %v130_v59, %v129_v58 }
  0x58   :  { %500 = vmatprep.subr.bf16.mxu1 %v499_v44  ;;  %v113_v5 = vld [vmem:[#allocation7 + $0x140] sm:$0xff]  ;;  %v114_v6 = vld [vmem:[#allocation7 + $0x148] sm:$0xff]  ;;  %v505_v7 = vpack.c.bf16 %v82_v62, %v81_v61  ;;  %v131_v8 = vld [vmem:[#allocation7 + $0x1d0] sm:$0xff]  ;;  %v507_v10 = vpack.c.bf16 %v100_v3, %v99_v2 }
  0x59   :  { %530 = vmatpush3.bf16.msra.mxu0 %v529_v51  ;;  %v132_v9 = vld [vmem:[#allocation7 + $0x1d8] sm:$0xff]  ;;  %v83_v11 = vld [vmem:[#allocation7 + $0x50] sm:$0xff]  ;;  %v537_v14 = vpack.c.bf16 %v114_v6, %v113_v5  ;;  %v101_v15 = vld [vmem:[#allocation7 + $0xe0] sm:$0xff] }
  0x5a   :  { %532 = vmatprep.subr.bf16.mxu0 %v531_v54  ;;  %v84_v12 = vld [vmem:[#allocation7 + $0x58] sm:$0xff]  ;;  %v102_v16 = vld [vmem:[#allocation7 + $0xe8] sm:$0xff]  ;;  %v539_v17 = vpack.c.bf16 %v132_v9, %v131_v8  ;;  %v115_v18 = vld [vmem:[#allocation7 + $0x150] sm:$0xff] }
  0x5b   :  { %502 = vmatpush3.bf16.msra.mxu1 %v501_v57  ;;  %v116_v19 = vld [vmem:[#allocation7 + $0x158] sm:$0xff]  ;;  %v509_v20 = vpack.c.bf16 %v84_v12, %v83_v11  ;;  %v133_v21 = vld [vmem:[#allocation7 + $0x1e0] sm:$0xff]  ;;  %v134_v22 = vld [vmem:[#allocation7 + $0x1e8] sm:$0xff]  ;;  %v511_v24 = vpack.c.bf16 %v102_v16, %v101_v15 }
  0x5c   :  { %504 = vmatprep.subr.bf16.mxu1 %v503_v60  ;;  %v72_v23 = vld [vmem:[#allocation2] sm:$0xff]  ;;  %v85_v25 = vld [vmem:[#allocation7 + $0x60] sm:$0xff]  ;;  %v86_v26 = vld [vmem:[#allocation7 + $0x68] sm:$0xff]  ;;  %v541_v29 = vpack.c.bf16 %v116_v19, %v115_v18  ;;  %v543_v32 = vpack.c.bf16 %v134_v22, %v133_v21 }
  0x5d   :  { %534 = vmatpush3.bf16.msra.mxu0 %v533_v1  ;;  %v215_v27 = vcombine.high %v72_v23, %v72_v23  ;;  %v222_v28 = vrot.slane %v72_v23, %v221_v13  ;;  %v103_v30 = vld [vmem:[#allocation7 + $0xf0] sm:$0xff]  ;;  %v104_v31 = vld [vmem:[#allocation7 + $0xf8] sm:$0xff]  ;;  %v117_v33 = vld [vmem:[#allocation7 + $0x160] sm:$0xff]  ;;  %v513_v37 = vpack.c.bf16 %v86_v26, %v85_v25 }
  0x5e   :  { %536 = vmatprep.subr.bf16.mxu0 %v535_v4  ;;  %v118_v34 = vld [vmem:[#allocation7 + $0x168] sm:$0xff]  ;;  %v135_v38 = vld [vmem:[#allocation7 + $0x1f0] sm:$0xff]  ;;  %v136_v39 = vld [vmem:[#allocation7 + $0x1f8] sm:$0xff]  ;;  %v515_v40 = vpack.c.bf16 %v104_v31, %v103_v30 }
  0x5f   :  { %506 = vmatpush3.bf16.msra.mxu1 %v505_v7  ;;  %v230_v35 = vcombine.high %v222_v28, %v222_v28  ;;  %v229_v36 = vrot.slane %v215_v27, %v221_v13  ;;  %v87_v41 = vld [vmem:[#allocation7 + $0x70] sm:$0xff]  ;;  %v88_v42 = vld [vmem:[#allocation7 + $0x78] sm:$0xff]  ;;  %v545_v44 = vpack.c.bf16 %v118_v34, %v117_v33  ;;  %v547_v45 = vpack.c.bf16 %v136_v39, %v135_v38 }
  0x60   :  { %508 = vmatprep.subr.bf16.mxu1 %v507_v10  ;;  %v119_v46 = vld [vmem:[#allocation7 + $0x170] sm:$0xff]  ;;  %v120_v47 = vld [vmem:[#allocation7 + $0x178] sm:$0xff]  ;;  %v517_v48 = vpack.c.bf16 %v88_v42, %v87_v41 }
  0x61   :  { %538 = vmatpush3.bf16.msra.mxu0 %v537_v14  ;;  %300 = vmatprep.mubr.f32.mxu1 %v230_v35  ;;  %v231_v43 = vcombine.high %v229_v36, %v229_v36  ;;  %v549_v49 = vpack.c.bf16 %v120_v47, %v119_v46  ;;  %v403_v59 = vld [vmem:[%s790_s4] ss:$0 sm:$0xff] }
  0x62   :  { %540 = vmatprep.subr.bf16.mxu0 %v539_v17 }
  0x63   :  { %510 = vmatpush3.bf16.msra.mxu1 %v509_v20  ;;  %370 = vmatprep.mubr.f32.mxu0 %v231_v43 }
  0x64   :  { %512 = vmatprep.subr.bf16.mxu1 %v511_v24 }
  0x65   :  { %542 = vmatpush3.bf16.msra.mxu0 %v541_v29 }
  0x66   :  { %544 = vmatprep.subr.bf16.mxu0 %v543_v32 }
  0x67   :  { %514 = vmatpush3.bf16.msra.mxu1 %v513_v37 }
  0x68   :  { %516 = vmatprep.subr.bf16.mxu1 %v515_v40 }
  0x69   :  { %546 = vmatpush3.bf16.msra.mxu0 %v545_v44 }
  0x6a   :  { %548 = vmatprep.subr.bf16.mxu0 %v547_v45 }
  0x6b   :  { %518 = vmatpush3.bf16.msra.mxu1 %v517_v48 }
  0x6d   :  { %550 = vmatpush3.bf16.msra.mxu0 %v549_v49 }
  0x6e   :  { %301 = vmatmul.mubr.f32.vlgmr.msra.gmra.mrb[0].mxu1 %v222_v28 }
  0x70   :  { %371 = vmatmul.mubr.f32.vlgmr.msra.gmra.mrb[2].mxu0 %v229_v36 }
 0x123   :  { %v210_v50 = vpop.f32.mrb[0].mxu0 }
 0x124   :  { %v483_v51 = vpop.f32.mrb[1].mxu0 }
 0x141   :  { %v439_v52 = vpop.f32.mrb[0].mxu1 }
 0x142   :  { %v440_v53 = vpop.f32.mrb[1].mxu1 }
 0x143   :  { %v441_v54 = vadd.f32 %v440_v53, %v439_v52  ;;  %v474_v55 = vpop.f32.mrb[2].mxu0 }
 0x144   :  { %v475_v56 = vpop.f32.mrb[3].mxu0 }
 0x145   :  { %v303_v57 = vadd.f32 %v441_v54, %v210_v50  ;;  %v476_v58 = vadd.f32 %v475_v56, %v474_v55 }
 0x147   :  { %v373_v60 = vadd.f32 %v476_v58, %v303_v57 }
 0x149   :  { %v383_v61 = vadd.f32 %v403_v59, %v373_v60 }
 0x14b   :  { %384 = vst [vmem:[#allocation10] sm:$0x3] %v383_v61 }
 0x14c   :  { %662 = shalt.err (!%p659_p8)
}
 0x14d   :  { %s663_s20 = scalar_lea.hbm %s791_s5, 32 }
 0x14e   :  { %p664_p9 = scmp.ne.s32.totalorder %s791_s5, %s663_s20  ;;  %p667_p10 = scmp.lt.u32.totalorder %s663_s20, %s791_s5 }
 0x150   :  { %p669_p11 = pnand %p667_p10, %p664_p9 }
 0x152   :  { %672 = shalt.err (!%p669_p11)
}
 0x153   :  { %394 = dma.vmem_to_hbm [thread:$0]  %s392_s16, 32, %s791_s5, [#allocation4]  }
 0x154   :  { %679 = dma.done.wait [#allocation4], 32  }
 0x155   :  { %680 = vsyncadd [#allocation4], 4294967264 }
 0x156   :  { %398 = vsyncpa [#allocation3], 1 }
 0x157   :  { %399 = vsyncpa [#allocation6], 1 }
 0x158   :  { %400 = vsyncpa [#allocation9], 1 }
 0x159   :  { %401 = vsyncpa [#allocation4], 1 }

</bundles_post_ra>
